<compile_context>
chip_gen: v6e
topology: v6e:2x2x1
jax: 0.10.0
libtpu: 0.0.40
codegen_flags: <defaults>
</compile_context>

<pallas_src>
import functools
import math

import jax
import jax.numpy as jnp
from jax import lax
from jax.experimental import pallas as pl
from jax.experimental.pallas import tpu as pltpu

_NEG_BIG = -1e30                      # finite "minus infinity" for masking
_VMEM_LIMIT = 48 * 1024 * 1024        # explicit scoped-VMEM budget (fits v7x 64 MiB)
_RESIDENT_BUDGET = 24 * 1024 * 1024   # max bytes for a VMEM-resident proxy matrix


def _round_up(x, m):
    return (x + m - 1) // m * m


def _normalize_scale_kernel(p_ref, o_ref, *, scale):
    # F.normalize(P, p=2, dim=1) * scale, fused:
    #   p * (rsqrt(max(sumsq, 1e-24)) * scale)  ==  scale * p / max(||p||, 1e-12)
    # Folding `scale` here removes one VPU multiply per (TB, TC) element from
    # the main loss kernel.
    p = p_ref[...].astype(jnp.float32)
    sumsq = jnp.sum(p * p, axis=1, keepdims=True)
    inv = lax.rsqrt(jnp.maximum(sumsq, 1e-24)) * scale
    o_ref[...] = (p * inv).astype(o_ref.dtype)


def _proxynca_kernel(x_ref, p_ref, tgt_ref, loss_ref, m_sc, l_sc, pos_sc, *,
                     num_classes, block_c, n_pad, n_c, resident):
    # x_ref:   (TB, Dp)  bf16 batch tile
    # p_ref:   resident  -> (C_pad, Dp) bf16 scale-folded normalized proxies,
    #                       VMEM-resident (constant block index) for the grid
    #          streaming -> (TC, Dp) bf16 proxy tile
    # tgt_ref: (TB, 1)   int32 targets
    # loss_ref:(TB, 1)   f32 per-example loss (written on the last C step)
    # m_sc / l_sc / pos_sc: (TB, 1) f32 online-LSE state (VMEM scratch)
    c = pl.program_id(1)

    @pl.when(c == 0)
    def _():
        m_sc[...] = jnp.full(m_sc.shape, _NEG_BIG, m_sc.dtype)
        l_sc[...] = jnp.zeros(l_sc.shape, l_sc.dtype)
        pos_sc[...] = jnp.zeros(pos_sc.shape, pos_sc.dtype)

    if resident:
        if n_c == 1:
            p = p_ref[...]
        else:
            off = pl.multiple_of(c * block_c, block_c)
            p = p_ref[pl.ds(off, block_c), :]
    else:
        p = p_ref[...]

    x = x_ref[...]
    # sim = x @ (scale * p_l2)^T : contract shared last dim (no transpose),
    # bf16 operands on the MXU, f32 accumulation.  Scale was folded into p.
    sim = lax.dot_general(x, p, (((1,), (1,)), ((), ())),
                          preferred_element_type=jnp.float32)      # (TB, TC) f32

    tgt = tgt_ref[...]                                             # (TB, 1) int32
    cls = c * block_c + lax.broadcasted_iota(jnp.int32, sim.shape, 1)
    is_pos = cls == tgt                                            # target class

    # positive similarity: sim[i, target_i]
    pos_sc[...] += jnp.sum(jnp.where(is_pos, sim, 0.0), axis=1, keepdims=True)

    # Padded (all-zero) proxy columns only need masking when padding exists at
    # all; this branch is static so the aligned case carries no extra VPU work.
    mask = is_pos if n_pad == 0 else (is_pos | (cls >= num_classes))

    # online, numerically-stable masked log-sum-exp over the negative classes
    neg = jnp.where(mask, _NEG_BIG, sim)
    tile_max = jnp.max(neg, axis=1, keepdims=True)
    m_new = jnp.maximum(m_sc[...], tile_max)
    alpha = jnp.exp(m_sc[...] - m_new)
    l_sc[...] = alpha * l_sc[...] + jnp.sum(jnp.exp(neg - m_new),
                                            axis=1, keepdims=True)
    m_sc[...] = m_new

    @pl.when(c == n_c - 1)
    def _():
        loss_ref[...] = (jnp.log(l_sc[...]) + m_sc[...]
                         - pos_sc[...]).astype(loss_ref.dtype)


def proxy_nca_loss(x, proxies, target, scale=12.0, mxu_dtype=jnp.bfloat16):
    """Pallas implementation of ProxyNCA.forward(input, target)."""
    B, D = x.shape
    C, Dp = proxies.shape
    assert D == Dp
    # Degenerate C == 1 has no negative class: the reference loss is -inf/NaN
    # while the masked-LSE kernel would return a huge negative number instead.
    assert C >= 2, "ProxyNCA needs at least 2 classes"

    itemsize = jnp.dtype(mxu_dtype).itemsize
    D_pad = _round_up(D, 128)
    TC = min(512, _round_up(C, 128))
    C_pad = _round_up(C, TC)
    n_c = C_pad // TC
    n_pad = C_pad - C

    # Make the proxy matrix VMEM-resident (loaded once for the whole grid)
    # whenever it fits a conservative budget; 2x covers the buffer pair.
    resident = 2 * C_pad * D_pad * itemsize <= _RESIDENT_BUDGET

    # TB: resident path prefers 128 so n_b >= 2 engages both v7x TensorCores;
    # streaming path prefers a larger TB to lift arithmetic intensity on the
    # proxy re-stream (v6e HBM roofline).
    TB = min(128 if resident else 512, _round_up(B, 8))
    B_pad = _round_up(B, TB)
    n_b = B_pad // TB

    # ---- wrapper-side padding (skipped entirely when already aligned) ----
    x_c = x.astype(mxu_dtype)
    if (B_pad, D_pad) != (B, D):
        x_p = jnp.zeros((B_pad, D_pad), mxu_dtype).at[:B, :D].set(x_c)
    else:
        x_p = x_c

    p_f32 = proxies.astype(jnp.float32)
    if (C_pad, D_pad) != (C, D):
        p_p = jnp.zeros((C_pad, D_pad), jnp.float32).at[:C, :D].set(p_f32)
    else:
        p_p = p_f32

    tgt_i32 = target.astype(jnp.int32)
    if B_pad != B:
        tgt_p = jnp.zeros((B_pad, 1), jnp.int32).at[:B, 0].set(tgt_i32)
    else:
        tgt_p = tgt_i32.reshape(B, 1)

    # ---- proxy L2 normalization (+ scale fold), hoisted out of the B loop ----
    p_l2 = pl.pallas_call(
        functools.partial(_normalize_scale_kernel, scale=float(scale)),
        out_shape=jax.ShapeDtypeStruct((C_pad, D_pad), mxu_dtype),
        grid=(n_c,),
        in_specs=[pl.BlockSpec((TC, D_pad), lambda c: (c, 0))],
        out_specs=pl.BlockSpec((TC, D_pad), lambda c: (c, 0)),
        compiler_params=pltpu.CompilerParams(
            dimension_semantics=("parallel",),
            vmem_limit_bytes=_VMEM_LIMIT),
    )(p_p)

    # ---- main loss kernel: grid over (B tiles, C tiles) ----
    if resident:
        # Constant block index -> the full proxy matrix is DMA'd once and stays
        # resident in VMEM for the whole grid (no per-B-tile HBM re-stream).
        proxy_spec = pl.BlockSpec((C_pad, D_pad), lambda b, c: (0, 0))
    else:
        proxy_spec = pl.BlockSpec((TC, D_pad), lambda b, c: (c, 0),
                                  pipeline_mode=pl.Buffered(3))

    kernel = functools.partial(
        _proxynca_kernel, num_classes=C, block_c=TC, n_pad=n_pad, n_c=n_c,
        resident=resident)

    per_example = pl.pallas_call(
        kernel,
        out_shape=jax.ShapeDtypeStruct((B_pad, 1), jnp.float32),
        grid_spec=pltpu.PrefetchScalarGridSpec(
            num_scalar_prefetch=0,
            grid=(n_b, n_c),
            in_specs=[
                pl.BlockSpec((TB, D_pad), lambda b, c: (b, 0)),   # x tile
                proxy_spec,                                       # proxies
                pl.BlockSpec((TB, 1), lambda b, c: (b, 0)),       # targets
            ],
            out_specs=pl.BlockSpec((TB, 1), lambda b, c: (b, 0)),
            scratch_shapes=[pltpu.VMEM((TB, 1), jnp.float32)] * 3,
        ),
        compiler_params=pltpu.CompilerParams(
            dimension_semantics=("parallel", "arbitrary"),
            vmem_limit_bytes=_VMEM_LIMIT),
    )(x_p, p_l2, tgt_p)

    # Batch mean in the wrapper (drops padded rows); free at this size in XLA.
    # TODO(synk): a lane-dense (n_b, TB) per-example output layout is only
    # worth it if the masked (TB, 1) stores ever show up in a bundle dump.
    return jnp.mean(per_example[:B, 0])


def _reference_loss(x, proxies, target, scale=12.0):
    # Pure-f32 JAX reference mirroring the PyTorch forward.
    p_l2 = proxies / jnp.maximum(
        jnp.sqrt(jnp.sum(proxies * proxies, axis=1, keepdims=True)), 1e-12)
    sim = x @ p_l2.T * scale
    pos = jax.nn.one_hot(target, proxies.shape[0], dtype=jnp.float32)
    neg = 1.0 - pos
    pos_sim = sim[jnp.arange(x.shape[0]), target]
    return jnp.mean(-pos_sim + jnp.log(jnp.sum(neg * jnp.exp(sim), axis=-1)))


def _reference_loss_bf16(x, proxies, target, scale=12.0):
    # Emulates the kernel's numerics (scale folded into proxies, bf16 MXU
    # operands, f32 accumulation, masked LSE) for a tight correctness check.
    sumsq = jnp.sum(proxies.astype(jnp.float32) ** 2, axis=1, keepdims=True)
    p = (proxies * (lax.rsqrt(jnp.maximum(sumsq, 1e-24)) * scale)
         ).astype(jnp.bfloat16)
    xb = x.astype(jnp.bfloat16)
    sim = lax.dot_general(xb, p, (((1,), (1,)), ((), ())),
                          preferred_element_type=jnp.float32)
    pos_sim = sim[jnp.arange(x.shape[0]), target]
    one_hot = jax.nn.one_hot(target, proxies.shape[0], dtype=bool)
    lse = jax.nn.logsumexp(jnp.where(one_hot, -jnp.inf, sim), axis=-1)
    return jnp.mean(lse - pos_sim)


if __name__ == "__main__":
    # Module shapes: proxies is (numClasses, sizeEmbed); forward input is
    # (B, sizeEmbed) embeddings, target is (B,) int class labels.
    num_classes = 16
    size_embed = 32
    batch = 8
    scale = 12.0

    key = jax.random.PRNGKey(0)
    k_prox, k_x, k_t = jax.random.split(key, 3)

    # Deterministic kaiming_normal_(mode='fan_out') init:
    # fan_out = numClasses, gain = sqrt(2) -> std = sqrt(2 / numClasses)
    std = math.sqrt(2.0 / num_classes)
    proxies = jax.random.normal(k_prox, (num_classes, size_embed),
                                jnp.float32) * std
    x = jax.random.normal(k_x, (batch, size_embed), jnp.float32)
    target = jax.random.randint(k_t, (batch,), 0, num_classes, jnp.int32)

    loss = jax.block_until_ready(proxy_nca_loss(x, proxies, target, scale=scale))

    ref_bf16 = jax.block_until_ready(
        _reference_loss_bf16(x, proxies, target, scale=scale))
    ref_f32 = jax.block_until_ready(
        _reference_loss(x, proxies, target, scale=scale))

    # Tight check vs. a reference emulating the kernel's bf16-MXU numerics.
    assert jnp.allclose(loss, ref_bf16, rtol=2e-3, atol=2e-2), (loss, ref_bf16)
    # Loose check vs. the pure-f32 PyTorch-equivalent reference (bf16 operands
    # perturb the scaled similarities by up to a few 1e-1 at scale=12).
    assert jnp.allclose(loss, ref_f32, rtol=5e-2, atol=5e-1), (loss, ref_f32)

    print("KERNEL_OK")
</pallas_src>

<mosaic_0001>
module attributes {stable_mosaic.version = 11 : i64} {
  func.func @_normalize_scale_kernel(%arg0: i32, %arg1: memref<128x128xf32, #tpu.memory_space<vmem>>, %arg2: memref<128x128xbf16, #tpu.memory_space<vmem>>) attributes {dimension_semantics = [#tpu.dimension_semantics<parallel>], iteration_bounds = array<i64: 1>, scalar_prefetch = 0 : i64, scratch_operands = 0 : i64, tpu.core_type = #tpu.core_type<tc>, window_params = [{transform_indices = @transform_0, window_bounds = array<i64: 128, 128>}, {transform_indices = @transform_1, window_bounds = array<i64: 128, 128>}]} {
    %c0 = arith.constant 0 : index
    %c0_0 = arith.constant 0 : index
    %0 = vector.load %arg1[%c0, %c0_0] : memref<128x128xf32, #tpu.memory_space<vmem>>, vector<128x128xf32>
    %1 = arith.mulf %0, %0 : vector<128x128xf32>
    %cst = arith.constant dense<0.000000e+00> : vector<128xf32>
    %2 = vector.multi_reduction <add>, %1, %cst [1] : vector<128x128xf32> to vector<128xf32>
    %3 = vector.shape_cast %2 : vector<128xf32> to vector<128x1xf32>
    %cst_1 = arith.constant 1.000000e-24 : f32
    %4 = vector.broadcast %cst_1 : f32 to vector<128x1xf32>
    %5 = arith.maximumf %3, %4 : vector<128x1xf32>
    %6 = math.rsqrt %5 : vector<128x1xf32>
    %cst_2 = arith.constant 1.200000e+01 : f32
    %7 = vector.broadcast %cst_2 : f32 to vector<128x1xf32>
    %8 = arith.mulf %6, %7 : vector<128x1xf32>
    %9 = vector.broadcast %8 : vector<128x1xf32> to vector<128x128xf32>
    %10 = arith.mulf %0, %9 : vector<128x128xf32>
    %11 = arith.truncf %10 : vector<128x128xf32> to vector<128x128xbf16>
    %c0_3 = arith.constant 0 : index
    %c0_4 = arith.constant 0 : index
    %12 = vector.load %arg2[%c0_3, %c0_4] : memref<128x128xbf16, #tpu.memory_space<vmem>>, vector<128x128xbf16>
    tpu.vector_store %arg2[%c0_3, %c0_4], %11 {strides = array<i32>} : memref<128x128xbf16, #tpu.memory_space<vmem>>, vector<128x128xbf16>,
    return
  }
  func.func @transform_0(%arg0: i32) -> (i32, i32) {
    %c0_i32 = arith.constant 0 : i32
    %c0_i32_0 = arith.constant 0 : i32
    return %arg0, %c0_i32 : i32, i32
  }
  func.func @transform_1(%arg0: i32) -> (i32, i32) {
    %c0_i32 = arith.constant 0 : i32
    %c0_i32_0 = arith.constant 0 : i32
    return %arg0, %c0_i32 : i32, i32
  }
}

</mosaic_0001>

<bundles_post_ra>
// kernel: tpu_custom_call.1
= control target key start
LH: loop header
LB: loop body
LE: loop exit
PB: predicated region body
PF: predicated region fallthrough
CT: control target
= control target key end

     0   :  { %6 = vsyncpa [#allocation3], 0  ;;  %s511_s0 = inlined_call_operand.hbm [shape: f32[128,128], index: 0, kind: input, shape index: {}]   ;;  %s512_s1 = inlined_call_operand.hbm [shape: bf16[128,128], index: 1, kind: output, shape index: {}]  }
   0x1   :  { %7 = vsyncpa [#allocation4], 0  ;;  %s409_s6 = smov [#allocation2]  }
   0x2   :  { %s13_s7 = sshll.u32 %s409_s6, 4  ;;  %s14_s7 = int_to_ptr.vmem [resolvable:$true] %s13_s7 }
   0x3   :  { %s373_s8 = scalar_lea.vmem %s14_s7, 2048  ;;  %p378_p1 = scmp.lt.s32.totalorder %s14_s7, %s14_s7 }
   0x4   :  { %p374_p0 = scmp.ne.s32.totalorder %s14_s7, %s373_s8  ;;  %p379_p2 = scmp.lt.s32.totalorder %s373_s8, %s373_s8 }
   0x6   :  { %p380_p3 = por %p379_p2, %p378_p1 }
   0x8   :  { %p381_p4 = pnand %p380_p3, %p374_p0 }
   0xa   :  { %384 = shalt.err (!%p381_p4)
}
   0xb   :  { %s410_s9 = smov 128   ;;  %s411_s10 = smov 8  }
   0xc   :  { %19 = dma.hbm_to_vmem [thread:$0]  %s511_s0, 2048, %s14_s7, [#allocation3], %s410_s9, %s410_s9, %s411_s10  }
   0xd   :  { %405 = dma.done.wait [#allocation3], 2048  }
   0xe   :  { %406 = vsyncadd [#allocation3], 4294965248  ;;  %v428_v0 = vld [vmem:[#allocation2 + $0x10] sm:$0xff]  ;;  %v430_v1 = vld [vmem:[#allocation2] sm:$0xff]  ;;  %s412_s0 = smov [#allocation5]  }
   0xf   :  { %v432_v2 = vld [vmem:[#allocation2 + $0x18] sm:$0xff]  ;;  %v41_v3 = vmul.f32 %v428_v0, %v428_v0  ;;  %v39_v4 = vmul.f32 %v430_v1, %v430_v1  ;;  %v438_v5 = vld [vmem:[#allocation2 + $0x8] sm:$0xff]  ;;  %v446_v9 = vld [vmem:[#allocation2 + $0x20] sm:$0xff]  ;;  %s236_s13 = sshll.u32 %s412_s0, 4  ;;  %s237_s13 = int_to_ptr.vmem [resolvable:$true] %s236_s13 }
  0x10   :  { %v42_v6 = vmul.f32 %v432_v2, %v432_v2  ;;  %v40_v7 = vmul.f32 %v438_v5, %v438_v5  ;;  %v444_v8 = vld [vmem:[#allocation2 + $0x28] sm:$0xff]  ;;  %v43_v11 = vmul.f32 %v446_v9, %v446_v9  ;;  %v452_v12 = vld [vmem:[#allocation2 + $0x38] sm:$0xff]  ;;  %v454_v13 = vld [vmem:[#allocation2 + $0x30] sm:$0xff]  ;;  %s385_s14 = scalar_lea.vmem %s237_s13, 1024  ;;  %p390_p6 = scmp.lt.s32.totalorder %s237_s13, %s237_s13 }
  0x11   :  { %59 = vadd.xlane.f32.xlu1 %v41_v3  ;;  %55 = vadd.xlane.f32.xlu0 %v39_v4  ;;  %v44_v10 = vmul.f32 %v444_v8, %v444_v8  ;;  %v46_v14 = vmul.f32 %v452_v12, %v452_v12  ;;  %v45_v15 = vmul.f32 %v454_v13, %v454_v13  ;;  %v460_v16 = vld [vmem:[#allocation2 + $0x48] sm:$0xff]  ;;  %v462_v17 = vld [vmem:[#allocation2 + $0x40] sm:$0xff]  ;;  %v468_v20 = vld [vmem:[#allocation2 + $0x58] sm:$0xff]  ;;  %p386_p5 = scmp.ne.s32.totalorder %s237_s13, %s385_s14  ;;  %p391_p7 = scmp.lt.s32.totalorder %s385_s14, %s385_s14 }
  0x12   :  { %v48_v18 = vmul.f32 %v460_v16, %v460_v16  ;;  %v47_v19 = vmul.f32 %v462_v17, %v462_v17  ;;  %v470_v21 = vld [vmem:[#allocation2 + $0x50] sm:$0xff]  ;;  %v50_v22 = vmul.f32 %v468_v20, %v468_v20  ;;  %v476_v24 = vld [vmem:[#allocation2 + $0x68] sm:$0xff]  ;;  %v478_v25 = vld [vmem:[#allocation2 + $0x60] sm:$0xff] }
  0x13   :  { %v49_v23 = vmul.f32 %v470_v21, %v470_v21  ;;  %v52_v26 = vmul.f32 %v476_v24, %v476_v24  ;;  %v51_v27 = vmul.f32 %v478_v25, %v478_v25  ;;  %v484_v28 = vld [vmem:[#allocation2 + $0x78] sm:$0xff]  ;;  %v486_v29 = vld [vmem:[#allocation2 + $0x70] sm:$0xff]  ;;  %p392_p8 = por %p391_p7, %p390_p6 }
  0x14   :  { %v54_v30 = vmul.f32 %v484_v28, %v484_v28  ;;  %v53_v31 = vmul.f32 %v486_v29, %v486_v29 }
  0x15   :  { %61 = vadd.xlane.f32.xlu1 %v42_v6  ;;  %57 = vadd.xlane.f32.xlu0 %v40_v7  ;;  %p393_p9 = pnand %p392_p8, %p386_p5 }
  0x19   :  { %65 = vadd.xlane.f32.xlu1 %v44_v10  ;;  %63 = vadd.xlane.f32.xlu0 %v43_v11 }
  0x1d   :  { %69 = vadd.xlane.f32.xlu1 %v46_v14  ;;  %67 = vadd.xlane.f32.xlu0 %v45_v15 }
  0x21   :  { %73 = vadd.xlane.f32.xlu1 %v48_v18  ;;  %71 = vadd.xlane.f32.xlu0 %v47_v19 }
  0x25   :  { %77 = vadd.xlane.f32.xlu1 %v50_v22  ;;  %75 = vadd.xlane.f32.xlu0 %v49_v23 }
  0x29   :  { %81 = vadd.xlane.f32.xlu1 %v52_v26  ;;  %79 = vadd.xlane.f32.xlu0 %v51_v27 }
  0x2d   :  { %85 = vadd.xlane.f32.xlu1 %v54_v30  ;;  %83 = vadd.xlane.f32.xlu0 %v53_v31 }
  0x9a   :  { %v60_v32 = vpop.xlane.xlu1 %59  ;;  %v56_v33 = vpop.xlane.xlu0 %55 }
  0x9b   :  { %v89_v34 = vmax.f32 %v60_v32, 1e-24  ;;  %v87_v35 = vmax.f32 %v56_v33, 1e-24 }
  0x9d   :  { %333 = vrsqrt.f32 %v89_v34 }
  0x9e   :  { %335 = vrsqrt.f32 %v87_v35  ;;  %v62_v36 = vpop.xlane.xlu1 %61  ;;  %v58_v37 = vpop.xlane.xlu0 %57 }
  0x9f   :  { %v90_v38 = vmax.f32 %v62_v36, 1e-24  ;;  %v88_v39 = vmax.f32 %v58_v37, 1e-24 }
  0xa1   :  { %337 = vrsqrt.f32 %v90_v38 }
  0xa2   :  { %339 = vrsqrt.f32 %v88_v39  ;;  %v66_v40 = vpop.xlane.xlu1 %65  ;;  %v64_v41 = vpop.xlane.xlu0 %63 }
  0xa3   :  { %v92_v42 = vmax.f32 %v66_v40, 1e-24  ;;  %v91_v43 = vmax.f32 %v64_v41, 1e-24 }
  0xa5   :  { %341 = vrsqrt.f32 %v92_v42 }
  0xa6   :  { %343 = vrsqrt.f32 %v91_v43  ;;  %v70_v44 = vpop.xlane.xlu1 %69  ;;  %v68_v45 = vpop.xlane.xlu0 %67 }
  0xa7   :  { %v94_v46 = vmax.f32 %v70_v44, 1e-24  ;;  %v93_v47 = vmax.f32 %v68_v45, 1e-24 }
  0xa9   :  { %345 = vrsqrt.f32 %v94_v46 }
  0xaa   :  { %v334_v48 = vpop.eup %333  ;;  %347 = vrsqrt.f32 %v93_v47  ;;  %v74_v49 = vpop.xlane.xlu1 %73 }
  0xab   :  { %v72_v50 = vpop.xlane.xlu0 %71  ;;  %v336_v51 = vpop.eup %335  ;;  %v96_v52 = vmax.f32 %v74_v49, 1e-24  ;;  %v121_v54 = vmul.f32 12.0, %v334_v48 }
  0xac   :  { %v95_v53 = vmax.f32 %v72_v50, 1e-24  ;;  %v119_v56 = vmul.f32 12.0, %v336_v51 }
  0xad   :  { %349 = vrsqrt.f32 %v96_v52  ;;  %v137_v3 = vmul.f32 %v121_v54, %v428_v0 }
  0xae   :  { %v338_v55 = vpop.eup %337  ;;  %351 = vrsqrt.f32 %v95_v53  ;;  %v78_v57 = vpop.xlane.xlu1 %77  ;;  %v135_v7 = vmul.f32 %v119_v56, %v430_v1 }
  0xaf   :  { %v76_v58 = vpop.xlane.xlu0 %75  ;;  %v340_v59 = vpop.eup %339  ;;  %v122_v60 = vmul.f32 12.0, %v338_v55  ;;  %v98_v61 = vmax.f32 %v78_v57, 1e-24 }
  0xb0   :  { %v97_v62 = vmax.f32 %v76_v58, 1e-24  ;;  %v120_v63 = vmul.f32 12.0, %v340_v59 }
  0xb1   :  { %v138_v4 = vmul.f32 %v122_v60, %v432_v2  ;;  %353 = vrsqrt.f32 %v98_v61 }
  0xb2   :  { %v342_v6 = vpop.eup %341  ;;  %v136_v10 = vmul.f32 %v120_v63, %v438_v5  ;;  %355 = vrsqrt.f32 %v97_v62  ;;  %v82_v11 = vpop.xlane.xlu1 %81 }
  0xb3   :  { %v80_v14 = vpop.xlane.xlu0 %79  ;;  %v344_v15 = vpop.eup %343  ;;  %v288_v18 = vpack.c.bf16 %v138_v4, %v137_v3  ;;  %v124_v19 = vmul.f32 12.0, %v342_v6  ;;  %v100_v22 = vmax.f32 %v82_v11, 1e-24 }
  0xb4   :  { %v99_v23 = vmax.f32 %v80_v14, 1e-24  ;;  %v283_v26 = vpack.c.bf16 %v136_v10, %v135_v7  ;;  %v123_v27 = vmul.f32 12.0, %v344_v15 }
  0xb5   :  { %320 = vst [vmem:[#allocation5 + $0x8] sm:$0xff] %v288_v18   ;;  %v140_v0 = vmul.f32 %v124_v19, %v444_v8  ;;  %357 = vrsqrt.f32 %v100_v22 }
  0xb6   :  { %v346_v2 = vpop.eup %345  ;;  %284 = vst [vmem:[#allocation5] sm:$0xff] %v283_v26   ;;  %v139_v1 = vmul.f32 %v123_v27, %v446_v9  ;;  %359 = vrsqrt.f32 %v99_v23  ;;  %v86_v5 = vpop.xlane.xlu1 %85 }
  0xb7   :  { %v84_v30 = vpop.xlane.xlu0 %83  ;;  %v348_v31 = vpop.eup %347  ;;  %v126_v32 = vmul.f32 12.0, %v346_v2  ;;  %v102_v33 = vmax.f32 %v86_v5, 1e-24 }
  0xb8   :  { %v101_v34 = vmax.f32 %v84_v30, 1e-24  ;;  %v293_v35 = vpack.c.bf16 %v140_v0, %v139_v1  ;;  %v125_v36 = vmul.f32 12.0, %v348_v31 }
  0xb9   :  { %v142_v37 = vmul.f32 %v126_v32, %v452_v12  ;;  %361 = vrsqrt.f32 %v102_v33 }
  0xba   :  { %v350_v38 = vpop.eup %349  ;;  %321 = vst [vmem:[#allocation5 + $0x10] sm:$0xff] %v293_v35   ;;  %v141_v8 = vmul.f32 %v125_v36, %v454_v13  ;;  %363 = vrsqrt.f32 %v101_v34 }
  0xbb   :  { %v352_v39 = vpop.eup %351  ;;  %v128_v40 = vmul.f32 12.0, %v350_v38 }
  0xbc   :  { %v298_v9 = vpack.c.bf16 %v142_v37, %v141_v8  ;;  %v127_v41 = vmul.f32 12.0, %v352_v39 }
  0xbd   :  { %v144_v42 = vmul.f32 %v128_v40, %v460_v16 }
  0xbe   :  { %v354_v43 = vpop.eup %353  ;;  %322 = vst [vmem:[#allocation5 + $0x18] sm:$0xff] %v298_v9   ;;  %v143_v44 = vmul.f32 %v127_v41, %v462_v17 }
  0xbf   :  { %v356_v45 = vpop.eup %355  ;;  %v130_v46 = vmul.f32 12.0, %v354_v43 }
  0xc0   :  { %v303_v47 = vpack.c.bf16 %v144_v42, %v143_v44  ;;  %v129_v12 = vmul.f32 12.0, %v356_v45 }
  0xc1   :  { %v146_v48 = vmul.f32 %v130_v46, %v468_v20 }
  0xc2   :  { %v358_v49 = vpop.eup %357  ;;  %323 = vst [vmem:[#allocation5 + $0x20] sm:$0xff] %v303_v47   ;;  %v145_v13 = vmul.f32 %v129_v12, %v470_v21 }
  0xc3   :  { %v360_v50 = vpop.eup %359  ;;  %v132_v51 = vmul.f32 12.0, %v358_v49 }
  0xc4   :  { %v308_v52 = vpack.c.bf16 %v146_v48, %v145_v13  ;;  %v131_v53 = vmul.f32 12.0, %v360_v50 }
  0xc5   :  { %v148_v16 = vmul.f32 %v132_v51, %v476_v24 }
  0xc6   :  { %v362_v54 = vpop.eup %361  ;;  %324 = vst [vmem:[#allocation5 + $0x28] sm:$0xff] %v308_v52   ;;  %v147_v17 = vmul.f32 %v131_v53, %v478_v25 }
  0xc7   :  { %v364_v55 = vpop.eup %363  ;;  %v134_v56 = vmul.f32 12.0, %v362_v54 }
  0xc8   :  { %v313_v57 = vpack.c.bf16 %v148_v16, %v147_v17  ;;  %v133_v58 = vmul.f32 12.0, %v364_v55 }
  0xc9   :  { %v150_v20 = vmul.f32 %v134_v56, %v484_v28 }
  0xca   :  { %325 = vst [vmem:[#allocation5 + $0x30] sm:$0xff] %v313_v57   ;;  %v149_v21 = vmul.f32 %v133_v58, %v486_v29 }
  0xcc   :  { %v318_v59 = vpack.c.bf16 %v150_v20, %v149_v21 }
  0xce   :  { %326 = vst [vmem:[#allocation5 + $0x38] sm:$0xff] %v318_v59  }
  0xcf   :  { %396 = shalt.err (!%p393_p9)
}
  0xd0   :  { %s413_s15 = smov 64   ;;  %s414_s16 = smov 4  }
  0xd1   :  { %242 = dma.vmem_to_hbm [thread:$0]  %s237_s13, 1024, %s512_s1, [#allocation4], %s413_s15, %s413_s15, %s414_s16  }
  0xd2   :  { %407 = dma.done.wait [#allocation4], 1024  }
  0xd3   :  { %408 = vsyncadd [#allocation4], 4294966272 }
  0xd4   :  { %246 = vsyncpa [#allocation3], 1 }
  0xd5   :  { %247 = vsyncpa [#allocation4], 1 }

</bundles_post_ra>
